<compile_context>
chip_gen: v7x
topology: tpu7x:2x2x1
jax: 0.10.0
libtpu: 0.0.40
codegen_flags: <defaults>
</compile_context>

<pallas_src>
import functools

import jax
import jax.numpy as jnp
from jax.experimental import pallas as pl
from jax.experimental.pallas import tpu as pltpu

_LANES = 128
_SUBLANES = 8
# 2048x128 f32 block = 1 MiB; 2 inputs x 2 pipeline buffers = 4 MiB VMEM,
# comfortably inside v5e's 16 MiB / v7x's 32 MiB default scoped limits.
_MAX_BLOCK_ROWS = 2048
_LOG2 = 0.6931471805599453


def _logcosh_kernel(yt_ref, yp_ref, o_ref, acc_ref, *,
                    block_rows, total_rows, blocks_per_split):
    c = pl.program_id(0)   # split axis ("parallel" -> megacore shard on v7x)
    j = pl.program_id(1)   # reduction axis within the split ("arbitrary")

    @pl.when(j == 0)
    def _():
        acc_ref[...] = jnp.zeros_like(acc_ref)

    # Inputs may be bf16 in HBM; do the math in f32 inside the kernel.
    yt = yt_ref[...].astype(jnp.float32)
    yp = yp_ref[...].astype(jnp.float32)
    a = jnp.abs(yp - yt)
    # Numerically stable log(cosh(x)) = |x| + log1p(exp(-2|x|)) - log(2).
    lc = a + jnp.log1p(jnp.exp(-2.0 * a)) - jnp.float32(_LOG2)

    # Mask rows past the logical end of the array (partial / over-split blocks
    # may contain clamped or stale data) -> zero contribution.
    g = c * blocks_per_split + j                      # logical block index
    row_ids = jax.lax.broadcasted_iota(jnp.int32, (block_rows, _LANES), 0)
    valid = (row_ids + g * block_rows) < total_rows
    lc = jnp.where(valid, lc, 0.0)

    # VPU-only partial reduction into a vreg-shaped (8,128) accumulator.
    acc_ref[...] += lc.reshape(block_rows // _SUBLANES, _SUBLANES, _LANES).sum(axis=0)

    # Single cross-lane reduce + scalar store, once per split.
    @pl.when(j == pl.num_programs(1) - 1)
    def _():
        o_ref[0, 0] = jnp.sum(acc_ref[...])


def log_loss(ytrue, ypred):
    """Pallas implementation of Log_Loss.forward (log-cosh loss)."""
    assert ytrue.shape == ypred.shape
    n = ytrue.size

    def _prep(x):
        x = jnp.ravel(x)
        # Keep f32/bf16 as-is in HBM (halves DMA traffic for bf16); only
        # unsupported dtypes pay a one-time upcast.
        if x.dtype in (jnp.dtype(jnp.float32), jnp.dtype(jnp.bfloat16)):
            return x
        return x.astype(jnp.float32)

    yt = _prep(ytrue)
    yp = _prep(ypred)

    tile = _SUBLANES * _LANES  # 1024
    padded = pl.cdiv(n, tile) * tile
    if padded != n:
        # TODO(synk): only sizes not divisible by 1024 pay this one-time pad copy;
        # typical power-of-two sizes take the zero-copy reshape path below.
        yt = jnp.pad(yt, (0, padded - n))
        yp = jnp.pad(yp, (0, padded - n))

    rows = padded // _LANES                 # multiple of 8
    yt2 = yt.reshape(rows, _LANES)
    yp2 = yp.reshape(rows, _LANES)

    block_rows = min(rows, _MAX_BLOCK_ROWS)            # multiple of 8
    num_blocks = pl.cdiv(rows, block_rows)
    num_splits = 2 if num_blocks >= 2 else 1           # use both TCs on v7x
    blocks_per_split = pl.cdiv(num_blocks, num_splits)

    def in_map(c, j):
        # Clamp so an over-split trailing block never indexes past the array;
        # the in-kernel row mask zeroes its contribution anyway.
        return (jnp.minimum(c * blocks_per_split + j, num_blocks - 1), 0)

    kernel = functools.partial(
        _logcosh_kernel,
        block_rows=block_rows,
        total_rows=rows,
        blocks_per_split=blocks_per_split,
    )

    partials = pl.pallas_call(
        kernel,
        out_shape=jax.ShapeDtypeStruct((num_splits, 1), jnp.float32),
        grid_spec=pltpu.PrefetchScalarGridSpec(
            num_scalar_prefetch=0,
            grid=(num_splits, blocks_per_split),
            in_specs=[
                pl.BlockSpec((block_rows, _LANES), in_map),
                pl.BlockSpec((block_rows, _LANES), in_map),
            ],
            out_specs=pl.BlockSpec(
                (1, 1), lambda c, j: (c, 0), memory_space=pltpu.SMEM
            ),
            scratch_shapes=[pltpu.VMEM((_SUBLANES, _LANES), jnp.float32)],
        ),
        compiler_params=pltpu.CompilerParams(
            dimension_semantics=("parallel", "arbitrary"),
        ),
    )(yt2, yp2)

    # Combine per-split partial sums and divide by the ORIGINAL element count.
    return jnp.sum(partials) / jnp.float32(n)


if __name__ == "__main__":
    key = jax.random.PRNGKey(0)

    # Check 1: small shape consistent with a regression loss (zero-copy path,
    # single block, single split).
    k1, k2 = jax.random.split(key)
    ytrue = jax.random.normal(k1, (2, 4, 16, 16), dtype=jnp.float32)
    ypred = jax.random.normal(k2, (2, 4, 16, 16), dtype=jnp.float32)
    loss = jax.block_until_ready(log_loss(ytrue, ypred))
    ref = jnp.mean(jnp.log(jnp.cosh(ypred - ytrue)))
    assert jnp.allclose(loss, ref, atol=1e-5, rtol=1e-4), (loss, ref)

    # Check 2: size not divisible by 1024 -> exercises padding, the partial
    # last block mask, and the 2-way parallel split.
    k3, k4 = jax.random.split(k2)
    yt_b = jax.random.normal(k3, (3, 1000, 100), dtype=jnp.float32)
    yp_b = jax.random.normal(k4, (3, 1000, 100), dtype=jnp.float32)
    loss_b = jax.block_until_ready(log_loss(yt_b, yp_b))
    ref_b = jnp.mean(jnp.log(jnp.cosh(yp_b - yt_b)))
    assert jnp.allclose(loss_b, ref_b, atol=1e-5, rtol=1e-4), (loss_b, ref_b)

    print("KERNEL_OK")
</pallas_src>

<mosaic_0001>
module attributes {stable_mosaic.version = 11 : i64} {
  func.func @_logcosh_kernel(%arg0: i32, %arg1: i32, %arg2: memref<16x128xf32, #tpu.memory_space<vmem>>, %arg3: memref<16x128xf32, #tpu.memory_space<vmem>>, %arg4: memref<1x1xf32, #tpu.memory_space<smem>>, %arg5: memref<8x128xf32, #tpu.memory_space<vmem>>) attributes {dimension_semantics = [#tpu.dimension_semantics<parallel>, #tpu.dimension_semantics<arbitrary>], iteration_bounds = array<i64: 1, 1>, scalar_prefetch = 0 : i64, scratch_operands = 1 : i64, tpu.core_type = #tpu.core_type<tc>, window_params = [{transform_indices = @transform_0, window_bounds = array<i64: 16, 128>}, {transform_indices = @transform_1, window_bounds = array<i64: 16, 128>}, {transform_indices = @transform_2, window_bounds = array<i64: 1, 1>}]} {
    %c0_i32 = arith.constant 0 : i32
    %0 = arith.cmpi eq, %arg1, %c0_i32 : i32
    %1 = arith.extui %0 : i1 to i32
    %c0_i32_0 = arith.constant 0 : i32
    %2 = arith.cmpi ne, %1, %c0_i32_0 : i32
    scf.if %2 {
      %cst_14 = arith.constant 0.000000e+00 : f32
      %32 = vector.broadcast %cst_14 : f32 to vector<8x128xf32>
      %c0_15 = arith.constant 0 : index
      %c0_16 = arith.constant 0 : index
      %33 = vector.load %arg5[%c0_15, %c0_16] : memref<8x128xf32, #tpu.memory_space<vmem>>, vector<8x128xf32>
      tpu.vector_store %arg5[%c0_15, %c0_16], %32 {strides = array<i32>} : memref<8x128xf32, #tpu.memory_space<vmem>>, vector<8x128xf32>,
    } else {
    }
    %c0 = arith.constant 0 : index
    %c0_1 = arith.constant 0 : index
    %3 = vector.load %arg2[%c0, %c0_1] : memref<16x128xf32, #tpu.memory_space<vmem>>, vector<16x128xf32>
    %c0_2 = arith.constant 0 : index
    %c0_3 = arith.constant 0 : index
    %4 = vector.load %arg3[%c0_2, %c0_3] : memref<16x128xf32, #tpu.memory_space<vmem>>, vector<16x128xf32>
    %5 = arith.subf %4, %3 : vector<16x128xf32>
    %6 = math.absf %5 : vector<16x128xf32>
    %cst = arith.constant -2.000000e+00 : f32
    %7 = vector.broadcast %cst : f32 to vector<16x128xf32>
    %8 = arith.mulf %7, %6 : vector<16x128xf32>
    %9 = math.exp %8 : vector<16x128xf32>
    %10 = math.log1p %9 : vector<16x128xf32>
    %11 = arith.addf %6, %10 : vector<16x128xf32>
    %cst_4 = arith.constant 0.693147182 : f32
    %12 = vector.broadcast %cst_4 : f32 to vector<16x128xf32>
    %13 = arith.subf %11, %12 : vector<16x128xf32>
    %c1_i32 = arith.constant 1 : i32
    %14 = arith.muli %arg0, %c1_i32 : i32
    %15 = arith.addi %14, %arg1 : i32
    %16 = tpu.iota {dimensions = array<i32: 0>} : vector<16x128xi32>
    %c16_i32 = arith.constant 16 : i32
    %17 = arith.muli %15, %c16_i32 : i32
    %18 = vector.broadcast %17 : i32 to vector<16x128xi32>
    %19 = arith.addi %16, %18 : vector<16x128xi32>
    %c16_i32_5 = arith.constant 16 : i32
    %20 = vector.broadcast %c16_i32_5 : i32 to vector<16x128xi32>
    %21 = arith.cmpi slt, %19, %20 : vector<16x128xi32>
    %cst_6 = arith.constant 0.000000e+00 : f32
    %22 = vector.broadcast %cst_6 : f32 to vector<16x128xf32>
    %23 = arith.select %21, %13, %22 : vector<16x128xi1>, vector<16x128xf32>
    %c0_7 = arith.constant 0 : index
    %c0_8 = arith.constant 0 : index
    %24 = vector.load %arg5[%c0_7, %c0_8] : memref<8x128xf32, #tpu.memory_space<vmem>>, vector<8x128xf32>
    %25 = vector.shape_cast %23 : vector<16x128xf32> to vector<2x8x128xf32>
    %cst_9 = arith.constant dense<0.000000e+00> : vector<8x128xf32>
    %26 = vector.multi_reduction <add>, %25, %cst_9 [0] : vector<2x8x128xf32> to vector<8x128xf32>
    %27 = arith.addf %24, %26 : vector<8x128xf32>
    %c0_10 = arith.constant 0 : index
    %c0_11 = arith.constant 0 : index
    %28 = vector.load %arg5[%c0_10, %c0_11] : memref<8x128xf32, #tpu.memory_space<vmem>>, vector<8x128xf32>
    tpu.vector_store %arg5[%c0_10, %c0_11], %27 {strides = array<i32>} : memref<8x128xf32, #tpu.memory_space<vmem>>, vector<8x128xf32>,
    %c0_i32_12 = arith.constant 0 : i32
    %29 = arith.cmpi eq, %arg1, %c0_i32_12 : i32
    %30 = arith.extui %29 : i1 to i32
    %c0_i32_13 = arith.constant 0 : i32
    %31 = arith.cmpi ne, %30, %c0_i32_13 : i32
    scf.if %31 {
      %c0_14 = arith.constant 0 : index
      %c0_15 = arith.constant 0 : index
      %32 = vector.load %arg5[%c0_14, %c0_15] : memref<8x128xf32, #tpu.memory_space<vmem>>, vector<8x128xf32>
      %33 = vector.shape_cast %32 : vector<8x128xf32> to vector<1x8x128xf32>
      %cst_16 = arith.constant dense<0.000000e+00> : vector<1xf32>
      %34 = vector.multi_reduction <add>, %33, %cst_16 [1, 2] : vector<1x8x128xf32> to vector<1xf32>
      %35 = vector.shape_cast %34 : vector<1xf32> to vector<1x1x1xf32>
      %36 = vector.extract %35[0, 0, 0] : f32 from vector<1x1x1xf32>
      %c0_17 = arith.constant 0 : index
      %c0_18 = arith.constant 0 : index
      %37 = memref.load %arg4[%c0_17, %c0_18] : memref<1x1xf32, #tpu.memory_space<smem>>
      memref.store %36, %arg4[%c0_17, %c0_18] : memref<1x1xf32, #tpu.memory_space<smem>>
    } else {
    }
    return
  }
  func.func @transform_0(%arg0: i32, %arg1: i32) -> (i32, i32) {
    %c1_i32 = arith.constant 1 : i32
    %0 = arith.muli %arg0, %c1_i32 : i32
    %1 = arith.addi %0, %arg1 : i32
    %c0_i32 = arith.constant 0 : i32
    %2 = arith.minsi %1, %c0_i32 : i32
    %c0_i32_0 = arith.constant 0 : i32
    %c0_i32_1 = arith.constant 0 : i32
    return %2, %c0_i32_0 : i32, i32
  }
  func.func @transform_1(%arg0: i32, %arg1: i32) -> (i32, i32) {
    %c1_i32 = arith.constant 1 : i32
    %0 = arith.muli %arg0, %c1_i32 : i32
    %1 = arith.addi %0, %arg1 : i32
    %c0_i32 = arith.constant 0 : i32
    %2 = arith.minsi %1, %c0_i32 : i32
    %c0_i32_0 = arith.constant 0 : i32
    %c0_i32_1 = arith.constant 0 : i32
    return %2, %c0_i32_0 : i32, i32
  }
  func.func @transform_2(%arg0: i32, %arg1: i32) -> (i32, i32) {
    %c0_i32 = arith.constant 0 : i32
    %c0_i32_0 = arith.constant 0 : i32
    return %arg0, %c0_i32 : i32, i32
  }
}

</mosaic_0001>

<bundles_post_ra>
// kernel: tpu_custom_call.1
= control target key start
LH: loop header
LB: loop body
LE: loop exit
PB: predicated region body
PF: predicated region fallthrough
CT: control target
= control target key end

     0   :  { %7 = vsyncpa [#allocation4], 0  ;;  %s284_s0 = inlined_call_operand.hbm [shape: f32[16,128], index: 0, kind: input, shape index: {}]   ;;  %s285_s1 = inlined_call_operand.hbm [shape: f32[16,128], index: 1, kind: input, shape index: {}]   ;;  %s286_s2 = inlined_call_operand.hbm [shape: f32[1,1], index: 2, kind: output, shape index: {}]  }
   0x1   :  { %8 = vsyncpa [#allocation7], 0 }
   0x2   :  { %9 = vsyncpa [#allocation5], 0  ;;  %s228_s9 = smov [#allocation3]   ;;  %s168_s13 = scalar_lea.hbm %s284_s0, 256 }
   0x3   :  { %s21_s10 = sshll.u32 %s228_s9, 4  ;;  %p169_p0 = scmp.ne.s32.totalorder %s284_s0, %s168_s13  ;;  %s22_s10 = int_to_ptr.vmem [resolvable:$true] %s21_s10 }
   0x4   :  { %p172_p1 = scmp.lt.u32.totalorder %s168_s13, %s284_s0 }
   0x6   :  { %p174_p2 = pnand %p172_p1, %p169_p0 }
   0x8   :  { %177 = shalt.err (!%p174_p2)
}
   0x9   :  { %s178_s18 = scalar_lea.vmem %s22_s10, 256  ;;  %p183_p4 = scmp.lt.s32.totalorder %s22_s10, %s22_s10 }
   0xa   :  { %p179_p3 = scmp.ne.s32.totalorder %s22_s10, %s178_s18  ;;  %p184_p5 = scmp.lt.s32.totalorder %s178_s18, %s178_s18 }
   0xc   :  { %p185_p6 = por %p184_p5, %p183_p4 }
   0xe   :  { %p186_p7 = pnand %p185_p6, %p179_p3 }
  0x10   :  { %189 = shalt.err (!%p186_p7)
}
  0x11   :  { %s229_s19 = smov 128   ;;  %s230_s20 = smov 8  }
  0x12   :  { %27 = dma.hbm_to_vmem [thread:$0]  %s284_s0, 256, %s22_s10, [#allocation4], %s229_s19, %s229_s19, %s230_s20  }
  0x13   :  { %s231_s23 = smov [#allocation6]   ;;  %s190_s27 = scalar_lea.hbm %s285_s1, 256 }
  0x14   :  { %s39_s24 = sshll.u32 %s231_s23, 4  ;;  %p191_p8 = scmp.ne.s32.totalorder %s285_s1, %s190_s27  ;;  %s40_s24 = int_to_ptr.vmem [resolvable:$true] %s39_s24 }
  0x15   :  { %p194_p9 = scmp.lt.u32.totalorder %s190_s27, %s285_s1 }
  0x17   :  { %p196_p10 = pnand %p194_p9, %p191_p8 }
  0x19   :  { %199 = shalt.err (!%p196_p10)
}
  0x1a   :  { %s200_s4 = scalar_lea.vmem %s40_s24, 256  ;;  %p205_p12 = scmp.lt.s32.totalorder %s40_s24, %s40_s24 }
  0x1b   :  { %p201_p11 = scmp.ne.s32.totalorder %s40_s24, %s200_s4  ;;  %p206_p13 = scmp.lt.s32.totalorder %s200_s4, %s200_s4 }
  0x1d   :  { %p207_p0 = por %p206_p13, %p205_p12 }
  0x1f   :  { %p208_p1 = pnand %p207_p0, %p201_p11 }
  0x21   :  { %211 = shalt.err (!%p208_p1)
}
  0x22   :  { %45 = dma.hbm_to_vmem [thread:$0]  %s285_s1, 256, %s40_s24, [#allocation7], %s229_s19, %s229_s19, %s230_s20  }
  0x23   :  { %222 = dma.done.wait [#allocation4], 256  }
  0x24   :  { %223 = vsyncadd [#allocation4], 4294967040 }
  0x25   :  { %224 = dma.done.wait [#allocation7], 256  }
  0x26   :  { %225 = vsyncadd [#allocation7], 4294967040  ;;  %v65_v0 = vld [vmem:[#allocation3] sm:$0xff]  ;;  %v66_v1 = vld [vmem:[#allocation3 + $0x8] sm:$0xff]  ;;  %s212_s8 = scalar_lea.hbm %s286_s2, 16 }
  0x27   :  { %v67_v2 = vld [vmem:[#allocation6] sm:$0xff]  ;;  %v68_v3 = vld [vmem:[#allocation6 + $0x8] sm:$0xff]  ;;  %p213_p2 = scmp.ne.s32.totalorder %s286_s2, %s212_s8  ;;  %p216_p3 = scmp.lt.u32.totalorder %s212_s8, %s286_s2 }
  0x28   :  { %v69_v4 = vsub.f32 %v67_v2, %v65_v0  ;;  %v70_v5 = vsub.f32 %v68_v3, %v66_v1 }
  0x29   :  { %p218_p4 = pnand %p216_p3, %p213_p2 }
  0x2a   :  { %v71_v6 = vand.u32 2147483647, %v69_v4  ;;  %v72_v7 = vand.u32 2147483647, %v70_v5 }
  0x2c   :  { %v73_v8 = vmul.f32 -2.0, %v71_v6  ;;  %v74_v9 = vmul.f32 -2.0, %v72_v7 }
  0x2e   :  { %v75_v10 = vmul.f32 1.442695, %v73_v8  ;;  %v77_v11 = vmul.f32 1.442695, %v74_v9 }
  0x30   :  { %160 = vpow2.f32 %v75_v10 }
  0x31   :  { %162 = vpow2.f32 %v77_v11 }
  0x3a   :  { %v161_v12 = vpop.eup %160 }
  0x3b   :  { %v163_v13 = vpop.eup %162  ;;  %v79_v14 = vadd.f32 1.0, %v161_v12  ;;  %v82_v16 = vmul.f32 -0.5, %v161_v12  ;;  %v85_v19 = vand.u32 2147483647, %v161_v12 }
  0x3c   :  { %v88_v15 = vadd.f32 1.0, %v163_v13  ;;  %v91_v17 = vmul.f32 -0.5, %v163_v13  ;;  %v94_v21 = vand.u32 2147483647, %v163_v13 }
  0x3d   :  { %164 = vlog2.f32 %v79_v14  ;;  %v83_v18 = vadd.f32 1.0, %v82_v16  ;;  %vm86_vm0 = vcmp.lt.f32.partialorder %v85_v19, 0.0004427343 }
  0x3e   :  { %166 = vlog2.f32 %v88_v15  ;;  %v92_v20 = vadd.f32 1.0, %v91_v17  ;;  %vm95_vm1 = vcmp.lt.f32.partialorder %v94_v21, 0.0004427343 }
  0x3f   :  { %v84_v22 = vmul.f32 %v161_v12, %v83_v18 }
  0x40   :  { %v93_v24 = vmul.f32 %v163_v13, %v92_v20 }
  0x47   :  { %v165_v23 = vpop.eup %164 }
  0x48   :  { %v167_v25 = vpop.eup %166  ;;  %v81_v26 = vmul.f32 0.6931472, %v165_v23 }
  0x49   :  { %v90_v27 = vmul.f32 0.6931472, %v167_v25 }
  0x4a   :  { %v87_v28 = vsel %vm86_vm0, %v84_v22, %v81_v26 }
  0x4b   :  { %v96_v29 = vsel %vm95_vm1, %v93_v24, %v90_v27  ;;  %v97_v30 = vadd.f32 %v87_v28, %v71_v6 }
  0x4c   :  { %v98_v31 = vadd.f32 %v96_v29, %v72_v7 }
  0x4d   :  { %v151_v32 = vadd.f32 -0.6931472, %v97_v30 }
  0x4e   :  { %v152_v33 = vadd.f32 -0.6931472, %v98_v31 }
  0x50   :  { %v114_v34 = vadd.f32 %v152_v33, %v151_v32 }
  0x52   :  { %121 = vadd.xlane.f32.xlu0 %v114_v34 }
  0xdf   :  { %v122_v35 = vpop.xlane.xlu0 %121 }
  0xe0   :  { %v123_v36 = vrot.slane %v122_v35, 4 }
  0xe2   :  { %v124_v37 = vadd.f32 %v123_v36, %v122_v35 }
  0xe4   :  { %v125_v38 = vrot.slane %v124_v37, 2 }
  0xe6   :  { %v126_v39 = vadd.f32 %v125_v38, %v124_v37 }
  0xe8   :  { %v127_v40 = vrot.slane %v126_v39, 1 }
  0xea   :  { %v128_v41 = vadd.f32 %v127_v40, %v126_v39 }
  0xec   :  { %153 = vpush %v128_v41 }
 0x11d   :  { %s154_s1 = spop %153 }
 0x11e   :  { %131 = sst [smem:[#allocation8]] %s154_s1 }
 0x11f   :  { %221 = shalt.err (!%p218_p4)
}
 0x120   :  { %s232_s13 = smov [#allocation8]  }
 0x121   :  { %139 = dma.smem_to_hbm %s232_s13, 16, %s286_s2, [#allocation5]  }
 0x122   :  { %226 = dma.done.wait [#allocation5], 16  }
 0x123   :  { %227 = vsyncadd [#allocation5], 4294967280 }
 0x124   :  { %143 = sfence }
 0x125   :  { %144 = vsyncpa [#allocation4], 1 }
 0x126   :  { %145 = vsyncpa [#allocation7], 1 }
 0x127   :  { %146 = vsyncpa [#allocation5], 1 }

</bundles_post_ra>
